<compile_context>
chip_gen: v7x
topology: tpu7x:2x2x1
jax: 0.10.0
libtpu: 0.0.40
codegen_flags: <defaults>
</compile_context>

<pallas_src>
import functools

import jax
import jax.numpy as jnp
from jax.experimental import pallas as pl
from jax.experimental.pallas import tpu as pltpu

# ---------------- configuration (stand-in for `param`) ----------------
LOC_SIZE = 15            # param.loc_size  (table gets one zeros row prepended)
POI_DIM = 8              # param.POI.shape[1]
L = LOC_SIZE + 1         # rows of the lookup table

TOKEN_TILE = 128         # tokens per grid step (use 512-2048 at production
                         # sizes; 128 keeps the toy demo to a single vreg row
                         # and respects v7x's smaller VMEM without tuning)


def build_poi_table(key):
    """Host-side __init__ preprocessing: prepend zeros row, then log(POI + 1)."""
    poi_raw = jax.random.uniform(key, (LOC_SIZE, POI_DIM), jnp.float32,
                                 minval=0.0, maxval=10.0)
    poi = jnp.concatenate([jnp.zeros((1, POI_DIM), jnp.float32), poi_raw], axis=0)
    return jnp.log(poi + 1.0)                                    # (L, P)


# ============================ gather kernel ============================
def _poi_emb_kernel(x_ref, poi_t_ref, out_ref):
    # x_ref     : (1, TILE)  int32 location ids (token tile, lane axis = tokens)
    # poi_t_ref : (P, L)     f32 transposed POI table (resident in VMEM)
    # out_ref   : (P, TILE)  f32 transposed embeddings (lane-dense store)
    P, Ltab = poi_t_ref.shape
    tile = x_ref.shape[1]

    # Broadcast the token ids across the P sublanes once (hoisted out of loop).
    idx = jnp.broadcast_to(x_ref[...], (P, tile))                # (P, TILE) int32

    # Unrolled VPU select accumulation over the L table rows: for each row l,
    # lanes whose id equals l take column l of the transposed table.
    acc = jnp.zeros((P, tile), jnp.float32)
    for l in range(Ltab):
        col = jnp.broadcast_to(poi_t_ref[:, l:l + 1], (P, tile))  # (P, TILE)
        acc = jnp.where(idx == l, col, acc)

    out_ref[...] = acc


@functools.partial(jax.jit, static_argnames=("token_tile",))
def poi_emb_forward(x, poi_table, token_tile=TOKEN_TILE):
    """x: (B, T) int32 location ids.  Returns (B, T, P) float32 embeddings."""
    B, T = x.shape
    Ltab, P = poi_table.shape

    n_tok = B * T
    n_pad = pl.cdiv(n_tok, token_tile) * token_tile

    # Flatten tokens onto the lane axis and pad to a whole number of tiles.
    # Pad ids are 0 -> zero row of the table; padding is sliced off below.
    x_flat = x.reshape(1, n_tok).astype(jnp.int32)
    x_pad = jnp.pad(x_flat, ((0, 0), (0, n_pad - n_tok)))

    poi_t = poi_table.T                                          # (P, L) tiny

    out_t = pl.pallas_call(
        _poi_emb_kernel,
        out_shape=jax.ShapeDtypeStruct((P, n_pad), jnp.float32),
        grid_spec=pltpu.PrefetchScalarGridSpec(
            num_scalar_prefetch=0,
            grid=(n_pad // token_tile,),
            in_specs=[
                pl.BlockSpec((1, token_tile), lambda i: (0, i)),   # token ids
                pl.BlockSpec((P, Ltab), lambda i: (0, 0)),         # resident table
            ],
            out_specs=pl.BlockSpec((P, token_tile), lambda i: (0, i)),
        ),
        compiler_params=pltpu.CompilerParams(
            dimension_semantics=("parallel",)),                    # 2 TCs on v7x
    )(x_pad, poi_t)

    # Wrapper-side layout plumbing: drop padding, transpose back, reshape.
    return out_t[:, :n_tok].T.reshape(B, T, P)


# ================================ demo =================================
if __name__ == "__main__":
    key = jax.random.PRNGKey(0)
    k_tab, k_idx = jax.random.split(key)

    B, T = 2, 8
    poi_table = build_poi_table(k_tab)                           # (16, 8)
    x = jax.random.randint(k_idx, (B, T), 0, L, dtype=jnp.int32)  # location ids

    out = poi_emb_forward(x, poi_table)
    jax.block_until_ready(out)

    # reference: plain row gather POI[x]  (== POI[np.ix_(locs)] per sequence)
    expected = poi_table[x]                                      # (B, T, P)

    assert out.shape == (B, T, POI_DIM)
    assert bool(jnp.all(jnp.isfinite(out)))
    assert bool(jnp.allclose(out, expected, atol=1e-6))
    print("KERNEL_OK")
</pallas_src>

<mosaic_0001>
module attributes {stable_mosaic.version = 11 : i64} {
  func.func @_poi_emb_kernel(%arg0: i32, %arg1: memref<1x128xi32, #tpu.memory_space<vmem>>, %arg2: memref<8x16xf32, #tpu.memory_space<vmem>>, %arg3: memref<8x128xf32, #tpu.memory_space<vmem>>) attributes {dimension_semantics = [#tpu.dimension_semantics<parallel>], iteration_bounds = array<i64: 1>, scalar_prefetch = 0 : i64, scratch_operands = 0 : i64, tpu.core_type = #tpu.core_type<tc>, window_params = [{transform_indices = @transform_0, window_bounds = array<i64: 1, 128>}, {pipeline_mode = #tpu.pipeline_mode<synchronous>, transform_indices = @transform_1, window_bounds = array<i64: 8, 16>}, {transform_indices = @transform_2, window_bounds = array<i64: 8, 128>}]} {
    %c0 = arith.constant 0 : index
    %c0_0 = arith.constant 0 : index
    %0 = vector.load %arg1[%c0, %c0_0] : memref<1x128xi32, #tpu.memory_space<vmem>>, vector<1x128xi32>
    %1 = vector.shape_cast %0 : vector<1x128xi32> to vector<1x128xi32>
    %2 = vector.broadcast %1 : vector<1x128xi32> to vector<8x128xi32>
    %cst = arith.constant 0.000000e+00 : f32
    %3 = vector.broadcast %cst : f32 to vector<8x128xf32>
    %c0_1 = arith.constant 0 : index
    %c0_2 = arith.constant 0 : index
    %4 = vector.load %arg2[%c0_1, %c0_2] : memref<8x16xf32, #tpu.memory_space<vmem>>, vector<8x1xf32>
    %5 = vector.shape_cast %4 : vector<8x1xf32> to vector<8x1xf32>
    %6 = vector.broadcast %5 : vector<8x1xf32> to vector<8x128xf32>
    %c0_i32 = arith.constant 0 : i32
    %7 = vector.broadcast %c0_i32 : i32 to vector<8x128xi32>
    %8 = arith.cmpi eq, %2, %7 : vector<8x128xi32>
    %9 = arith.select %8, %6, %3 : vector<8x128xi1>, vector<8x128xf32>
    %c0_3 = arith.constant 0 : index
    %c1 = arith.constant 1 : index
    %10 = vector.load %arg2[%c0_3, %c1] : memref<8x16xf32, #tpu.memory_space<vmem>>, vector<8x1xf32>
    %11 = vector.shape_cast %10 : vector<8x1xf32> to vector<8x1xf32>
    %12 = vector.broadcast %11 : vector<8x1xf32> to vector<8x128xf32>
    %c1_i32 = arith.constant 1 : i32
    %13 = vector.broadcast %c1_i32 : i32 to vector<8x128xi32>
    %14 = arith.cmpi eq, %2, %13 : vector<8x128xi32>
    %15 = arith.select %14, %12, %9 : vector<8x128xi1>, vector<8x128xf32>
    %c0_4 = arith.constant 0 : index
    %c2 = arith.constant 2 : index
    %16 = vector.load %arg2[%c0_4, %c2] : memref<8x16xf32, #tpu.memory_space<vmem>>, vector<8x1xf32>
    %17 = vector.shape_cast %16 : vector<8x1xf32> to vector<8x1xf32>
    %18 = vector.broadcast %17 : vector<8x1xf32> to vector<8x128xf32>
    %c2_i32 = arith.constant 2 : i32
    %19 = vector.broadcast %c2_i32 : i32 to vector<8x128xi32>
    %20 = arith.cmpi eq, %2, %19 : vector<8x128xi32>
    %21 = arith.select %20, %18, %15 : vector<8x128xi1>, vector<8x128xf32>
    %c0_5 = arith.constant 0 : index
    %c3 = arith.constant 3 : index
    %22 = vector.load %arg2[%c0_5, %c3] : memref<8x16xf32, #tpu.memory_space<vmem>>, vector<8x1xf32>
    %23 = vector.shape_cast %22 : vector<8x1xf32> to vector<8x1xf32>
    %24 = vector.broadcast %23 : vector<8x1xf32> to vector<8x128xf32>
    %c3_i32 = arith.constant 3 : i32
    %25 = vector.broadcast %c3_i32 : i32 to vector<8x128xi32>
    %26 = arith.cmpi eq, %2, %25 : vector<8x128xi32>
    %27 = arith.select %26, %24, %21 : vector<8x128xi1>, vector<8x128xf32>
    %c0_6 = arith.constant 0 : index
    %c4 = arith.constant 4 : index
    %28 = vector.load %arg2[%c0_6, %c4] : memref<8x16xf32, #tpu.memory_space<vmem>>, vector<8x1xf32>
    %29 = vector.shape_cast %28 : vector<8x1xf32> to vector<8x1xf32>
    %30 = vector.broadcast %29 : vector<8x1xf32> to vector<8x128xf32>
    %c4_i32 = arith.constant 4 : i32
    %31 = vector.broadcast %c4_i32 : i32 to vector<8x128xi32>
    %32 = arith.cmpi eq, %2, %31 : vector<8x128xi32>
    %33 = arith.select %32, %30, %27 : vector<8x128xi1>, vector<8x128xf32>
    %c0_7 = arith.constant 0 : index
    %c5 = arith.constant 5 : index
    %34 = vector.load %arg2[%c0_7, %c5] : memref<8x16xf32, #tpu.memory_space<vmem>>, vector<8x1xf32>
    %35 = vector.shape_cast %34 : vector<8x1xf32> to vector<8x1xf32>
    %36 = vector.broadcast %35 : vector<8x1xf32> to vector<8x128xf32>
    %c5_i32 = arith.constant 5 : i32
    %37 = vector.broadcast %c5_i32 : i32 to vector<8x128xi32>
    %38 = arith.cmpi eq, %2, %37 : vector<8x128xi32>
    %39 = arith.select %38, %36, %33 : vector<8x128xi1>, vector<8x128xf32>
    %c0_8 = arith.constant 0 : index
    %c6 = arith.constant 6 : index
    %40 = vector.load %arg2[%c0_8, %c6] : memref<8x16xf32, #tpu.memory_space<vmem>>, vector<8x1xf32>
    %41 = vector.shape_cast %40 : vector<8x1xf32> to vector<8x1xf32>
    %42 = vector.broadcast %41 : vector<8x1xf32> to vector<8x128xf32>
    %c6_i32 = arith.constant 6 : i32
    %43 = vector.broadcast %c6_i32 : i32 to vector<8x128xi32>
    %44 = arith.cmpi eq, %2, %43 : vector<8x128xi32>
    %45 = arith.select %44, %42, %39 : vector<8x128xi1>, vector<8x128xf32>
    %c0_9 = arith.constant 0 : index
    %c7 = arith.constant 7 : index
    %46 = vector.load %arg2[%c0_9, %c7] : memref<8x16xf32, #tpu.memory_space<vmem>>, vector<8x1xf32>
    %47 = vector.shape_cast %46 : vector<8x1xf32> to vector<8x1xf32>
    %48 = vector.broadcast %47 : vector<8x1xf32> to vector<8x128xf32>
    %c7_i32 = arith.constant 7 : i32
    %49 = vector.broadcast %c7_i32 : i32 to vector<8x128xi32>
    %50 = arith.cmpi eq, %2, %49 : vector<8x128xi32>
    %51 = arith.select %50, %48, %45 : vector<8x128xi1>, vector<8x128xf32>
    %c0_10 = arith.constant 0 : index
    %c8 = arith.constant 8 : index
    %52 = vector.load %arg2[%c0_10, %c8] : memref<8x16xf32, #tpu.memory_space<vmem>>, vector<8x1xf32>
    %53 = vector.shape_cast %52 : vector<8x1xf32> to vector<8x1xf32>
    %54 = vector.broadcast %53 : vector<8x1xf32> to vector<8x128xf32>
    %c8_i32 = arith.constant 8 : i32
    %55 = vector.broadcast %c8_i32 : i32 to vector<8x128xi32>
    %56 = arith.cmpi eq, %2, %55 : vector<8x128xi32>
    %57 = arith.select %56, %54, %51 : vector<8x128xi1>, vector<8x128xf32>
    %c0_11 = arith.constant 0 : index
    %c9 = arith.constant 9 : index
    %58 = vector.load %arg2[%c0_11, %c9] : memref<8x16xf32, #tpu.memory_space<vmem>>, vector<8x1xf32>
    %59 = vector.shape_cast %58 : vector<8x1xf32> to vector<8x1xf32>
    %60 = vector.broadcast %59 : vector<8x1xf32> to vector<8x128xf32>
    %c9_i32 = arith.constant 9 : i32
    %61 = vector.broadcast %c9_i32 : i32 to vector<8x128xi32>
    %62 = arith.cmpi eq, %2, %61 : vector<8x128xi32>
    %63 = arith.select %62, %60, %57 : vector<8x128xi1>, vector<8x128xf32>
    %c0_12 = arith.constant 0 : index
    %c10 = arith.constant 10 : index
    %64 = vector.load %arg2[%c0_12, %c10] : memref<8x16xf32, #tpu.memory_space<vmem>>, vector<8x1xf32>
    %65 = vector.shape_cast %64 : vector<8x1xf32> to vector<8x1xf32>
    %66 = vector.broadcast %65 : vector<8x1xf32> to vector<8x128xf32>
    %c10_i32 = arith.constant 10 : i32
    %67 = vector.broadcast %c10_i32 : i32 to vector<8x128xi32>
    %68 = arith.cmpi eq, %2, %67 : vector<8x128xi32>
    %69 = arith.select %68, %66, %63 : vector<8x128xi1>, vector<8x128xf32>
    %c0_13 = arith.constant 0 : index
    %c11 = arith.constant 11 : index
    %70 = vector.load %arg2[%c0_13, %c11] : memref<8x16xf32, #tpu.memory_space<vmem>>, vector<8x1xf32>
    %71 = vector.shape_cast %70 : vector<8x1xf32> to vector<8x1xf32>
    %72 = vector.broadcast %71 : vector<8x1xf32> to vector<8x128xf32>
    %c11_i32 = arith.constant 11 : i32
    %73 = vector.broadcast %c11_i32 : i32 to vector<8x128xi32>
    %74 = arith.cmpi eq, %2, %73 : vector<8x128xi32>
    %75 = arith.select %74, %72, %69 : vector<8x128xi1>, vector<8x128xf32>
    %c0_14 = arith.constant 0 : index
    %c12 = arith.constant 12 : index
    %76 = vector.load %arg2[%c0_14, %c12] : memref<8x16xf32, #tpu.memory_space<vmem>>, vector<8x1xf32>
    %77 = vector.shape_cast %76 : vector<8x1xf32> to vector<8x1xf32>
    %78 = vector.broadcast %77 : vector<8x1xf32> to vector<8x128xf32>
    %c12_i32 = arith.constant 12 : i32
    %79 = vector.broadcast %c12_i32 : i32 to vector<8x128xi32>
    %80 = arith.cmpi eq, %2, %79 : vector<8x128xi32>
    %81 = arith.select %80, %78, %75 : vector<8x128xi1>, vector<8x128xf32>
    %c0_15 = arith.constant 0 : index
    %c13 = arith.constant 13 : index
    %82 = vector.load %arg2[%c0_15, %c13] : memref<8x16xf32, #tpu.memory_space<vmem>>, vector<8x1xf32>
    %83 = vector.shape_cast %82 : vector<8x1xf32> to vector<8x1xf32>
    %84 = vector.broadcast %83 : vector<8x1xf32> to vector<8x128xf32>
    %c13_i32 = arith.constant 13 : i32
    %85 = vector.broadcast %c13_i32 : i32 to vector<8x128xi32>
    %86 = arith.cmpi eq, %2, %85 : vector<8x128xi32>
    %87 = arith.select %86, %84, %81 : vector<8x128xi1>, vector<8x128xf32>
    %c0_16 = arith.constant 0 : index
    %c14 = arith.constant 14 : index
    %88 = vector.load %arg2[%c0_16, %c14] : memref<8x16xf32, #tpu.memory_space<vmem>>, vector<8x1xf32>
    %89 = vector.shape_cast %88 : vector<8x1xf32> to vector<8x1xf32>
    %90 = vector.broadcast %89 : vector<8x1xf32> to vector<8x128xf32>
    %c14_i32 = arith.constant 14 : i32
    %91 = vector.broadcast %c14_i32 : i32 to vector<8x128xi32>
    %92 = arith.cmpi eq, %2, %91 : vector<8x128xi32>
    %93 = arith.select %92, %90, %87 : vector<8x128xi1>, vector<8x128xf32>
    %c0_17 = arith.constant 0 : index
    %c15 = arith.constant 15 : index
    %94 = vector.load %arg2[%c0_17, %c15] : memref<8x16xf32, #tpu.memory_space<vmem>>, vector<8x1xf32>
    %95 = vector.shape_cast %94 : vector<8x1xf32> to vector<8x1xf32>
    %96 = vector.broadcast %95 : vector<8x1xf32> to vector<8x128xf32>
    %c15_i32 = arith.constant 15 : i32
    %97 = vector.broadcast %c15_i32 : i32 to vector<8x128xi32>
    %98 = arith.cmpi eq, %2, %97 : vector<8x128xi32>
    %99 = arith.select %98, %96, %93 : vector<8x128xi1>, vector<8x128xf32>
    %c0_18 = arith.constant 0 : index
    %c0_19 = arith.constant 0 : index
    %100 = vector.load %arg3[%c0_18, %c0_19] : memref<8x128xf32, #tpu.memory_space<vmem>>, vector<8x128xf32>
    tpu.vector_store %arg3[%c0_18, %c0_19], %99 {strides = array<i32>} : memref<8x128xf32, #tpu.memory_space<vmem>>, vector<8x128xf32>,
    return
  }
  func.func @transform_0(%arg0: i32) -> (i32, i32) {
    %c0_i32 = arith.constant 0 : i32
    %c0_i32_0 = arith.constant 0 : i32
    return %c0_i32, %arg0 : i32, i32
  }
  func.func @transform_1(%arg0: i32) -> (i32, i32) {
    %c0_i32 = arith.constant 0 : i32
    %c0_i32_0 = arith.constant 0 : i32
    %c0_i32_1 = arith.constant 0 : i32
    return %c0_i32, %c0_i32_0 : i32, i32
  }
  func.func @transform_2(%arg0: i32) -> (i32, i32) {
    %c0_i32 = arith.constant 0 : i32
    %c0_i32_0 = arith.constant 0 : i32
    return %c0_i32, %arg0 : i32, i32
  }
}

</mosaic_0001>

<bundles_post_ra>
// kernel: poi_emb_forward.1
= control target key start
LH: loop header
LB: loop body
LE: loop exit
PB: predicated region body
PF: predicated region fallthrough
CT: control target
= control target key end

     0   :  { %v153_v0 = vmov 2   ;;  %v154_v1 = vmov 0   ;;  %v155_v3 = vmov 3   ;;  %v156_v4 = vmov 1   ;;  %s193_s1 = inlined_call_operand.vmem [shape: f32[8,16], index: 1, kind: input, shape index: {}]   ;;  %s194_s0 = inlined_call_operand.vmem [shape: s32[1,128], index: 0, kind: input, shape index: {}]   ;;  %s195_s2 = inlined_call_operand.vmem [shape: f32[8,128], index: 2, kind: output, shape index: {}]  }
   0x1   :  { %138 = vset.pattern.permute.xlu1 %v153_v0  ;;  %136 = vset.pattern.permute.xlu0 %v154_v1  ;;  %v16_v2 = vld [vmem:[%s193_s1] sm:$0xff]  ;;  %v157_v5 = vmov 4   ;;  %v158_v6 = vmov 5   ;;  %v159_v7 = vmov 6   ;;  %v160_v8 = vmov 8  }
   0x2   :  { %31 = vperm.xlu1 %138, %v16_v2   ;;  %19 = vperm.xlu0 %136, %v16_v2   ;;  %v161_v9 = vmov 7   ;;  %v162_v10 = vmov 11   ;;  %v163_v11 = vmov 9   ;;  %v164_v12 = vmov 14   ;;  %v119_v21 = vld [vmem:[%s194_s0] ss:$0 sm:$0xff] }
   0x3   :  { %v165_v13 = vmov 10   ;;  %v166_v14 = vmov 15   ;;  %v167_v15 = vmov 12   ;;  %v168_v16 = vmov 13  }
   0x4   :  { %vm22_vm0 = vcmp.eq.s32.totalorder %v119_v21, 0  ;;  %vm28_vm1 = vcmp.eq.s32.totalorder %v119_v21, 1  ;;  %vm34_vm2 = vcmp.eq.s32.totalorder %v119_v21, 2  ;;  %vm40_vm3 = vcmp.eq.s32.totalorder %v119_v21, 3 }
   0x5   :  { %vm46_vm4 = vcmp.eq.s32.totalorder %v119_v21, 4  ;;  %vm52_vm5 = vcmp.eq.s32.totalorder %v119_v21, 5  ;;  %vm58_vm6 = vcmp.eq.s32.totalorder %v119_v21, 6  ;;  %vm64_vm7 = vcmp.eq.s32.totalorder %v119_v21, 7 }
   0x6   :  { %139 = vset.pattern.permute.xlu1 %v155_v3  ;;  %137 = vset.pattern.permute.xlu0 %v156_v4  ;;  %vm70_vm8 = vcmp.eq.s32.totalorder %v119_v21, 8  ;;  %vm76_vm9 = vcmp.eq.s32.totalorder %v119_v21, 9  ;;  %vm82_vm10 = vcmp.eq.s32.totalorder %v119_v21, 10  ;;  %vm88_vm11 = vcmp.eq.s32.totalorder %v119_v21, 11 }
   0x7   :  { %37 = vperm.xlu1 %139, %v16_v2   ;;  %25 = vperm.xlu0 %137, %v16_v2   ;;  %vm94_vm12 = vcmp.eq.s32.totalorder %v119_v21, 12  ;;  %vm100_vm13 = vcmp.eq.s32.totalorder %v119_v21, 13  ;;  %vm106_vm14 = vcmp.eq.s32.totalorder %v119_v21, 14  ;;  %vm112_vm15 = vcmp.eq.s32.totalorder %v119_v21, 15 }
   0xb   :  { %140 = vset.pattern.permute.xlu1 %v157_v5  ;;  %141 = vset.pattern.permute.xlu0 %v158_v6 }
   0xc   :  { %43 = vperm.xlu1 %140, %v16_v2   ;;  %49 = vperm.xlu0 %141, %v16_v2  }
  0x10   :  { %142 = vset.pattern.permute.xlu1 %v159_v7  ;;  %144 = vset.pattern.permute.xlu0 %v160_v8 }
  0x11   :  { %55 = vperm.xlu1 %142, %v16_v2   ;;  %67 = vperm.xlu0 %144, %v16_v2  }
  0x15   :  { %143 = vset.pattern.permute.xlu1 %v161_v9  ;;  %147 = vset.pattern.permute.xlu0 %v162_v10 }
  0x16   :  { %61 = vperm.xlu1 %143, %v16_v2   ;;  %85 = vperm.xlu0 %147, %v16_v2  }
  0x1a   :  { %145 = vset.pattern.permute.xlu1 %v163_v11  ;;  %150 = vset.pattern.permute.xlu0 %v164_v12 }
  0x1b   :  { %73 = vperm.xlu1 %145, %v16_v2   ;;  %103 = vperm.xlu0 %150, %v16_v2  }
  0x1f   :  { %146 = vset.pattern.permute.xlu1 %v165_v13  ;;  %152 = vset.pattern.permute.xlu0 %v166_v14 }
  0x20   :  { %79 = vperm.xlu1 %146, %v16_v2  }
  0x24   :  { %148 = vset.pattern.permute.xlu1 %v167_v15 }
  0x25   :  { %91 = vperm.xlu1 %148, %v16_v2  }
  0x29   :  { %149 = vset.pattern.permute.xlu1 %v168_v16 }
  0x2a   :  { %97 = vperm.xlu1 %149, %v16_v2  }
  0x2e   :  { %151 = vset.pattern.permute.xlu1 %v166_v14 }
  0x2f   :  { %109 = vperm.xlu1 %151, %v16_v2  }
  0x81   :  { %v32_v17 = vpop.permute.xlu1 %31  ;;  %v20_v20 = vpop.permute.xlu0 %19 }
  0x82   :  { %v23_v23 = vsel %vm22_vm0, %v20_v20, 0.0 }
  0x86   :  { %v38_v18 = vpop.permute.xlu1 %37  ;;  %v26_v24 = vpop.permute.xlu0 %25 }
  0x87   :  { %v29_v25 = vsel %vm28_vm1, %v26_v24, %v23_v23 }
  0x88   :  { %v35_v27 = vsel %vm34_vm2, %v32_v17, %v29_v25 }
  0x89   :  { %v41_v29 = vsel %vm40_vm3, %v38_v18, %v35_v27 }
  0x8b   :  { %v44_v19 = vpop.permute.xlu1 %43  ;;  %v50_v31 = vpop.permute.xlu0 %49 }
  0x8c   :  { %v47_v30 = vsel %vm46_vm4, %v44_v19, %v41_v29 }
  0x8d   :  { %v53_v32 = vsel %vm52_vm5, %v50_v31, %v47_v30 }
  0x90   :  { %v56_v22 = vpop.permute.xlu1 %55  ;;  %v68_v36 = vpop.permute.xlu0 %67 }
  0x91   :  { %v59_v34 = vsel %vm58_vm6, %v56_v22, %v53_v32 }
  0x95   :  { %v62_v26 = vpop.permute.xlu1 %61  ;;  %v86_v41 = vpop.permute.xlu0 %85 }
  0x96   :  { %v65_v35 = vsel %vm64_vm7, %v62_v26, %v59_v34 }
  0x97   :  { %v71_v37 = vsel %vm70_vm8, %v68_v36, %v65_v35 }
  0x9a   :  { %v74_v28 = vpop.permute.xlu1 %73  ;;  %v104_v46 = vpop.permute.xlu0 %103 }
  0x9b   :  { %v77_v39 = vsel %vm76_vm9, %v74_v28, %v71_v37 }
  0x9f   :  { %v80_v33 = vpop.permute.xlu1 %79 }
  0xa0   :  { %v83_v40 = vsel %vm82_vm10, %v80_v33, %v77_v39 }
  0xa1   :  { %v89_v42 = vsel %vm88_vm11, %v86_v41, %v83_v40 }
  0xa4   :  { %v92_v38 = vpop.permute.xlu1 %91 }
  0xa5   :  { %v95_v44 = vsel %vm94_vm12, %v92_v38, %v89_v42 }
  0xa9   :  { %v98_v43 = vpop.permute.xlu1 %97 }
  0xaa   :  { %v101_v45 = vsel %vm100_vm13, %v98_v43, %v95_v44 }
  0xab   :  { %v107_v47 = vsel %vm106_vm14, %v104_v46, %v101_v45 }
  0xae   :  { %v110_v48 = vpop.permute.xlu1 %109 }
  0xaf   :  { %v113_v49 = vsel %vm112_vm15, %v110_v48, %v107_v47 }
  0xb0   :  { %114 = vst [vmem:[%s195_s2] sm:$0xff] %v113_v49 }

</bundles_post_ra>
